<compile_context>
chip_gen: v7x
topology: tpu7x:2x2x1
jax: 0.10.0
libtpu: 0.0.40
codegen_flags: <defaults>
</compile_context>

<pallas_src>
import jax
import jax.numpy as jnp
from jax.experimental import pallas as pl
from jax.experimental.pallas import tpu as pltpu

_MAX_LANE = 512                      # preferred lane-dense last dim
_MIN_LANE = 128                      # hardware lane count
_TARGET_TILE_BYTES = 4 * 1024 * 1024 # ~4 MiB per block
_VMEM_LIMIT_BYTES = 32 * 1024 * 1024 # legal on v5e/v6e (128 MiB phys) and v7x (64 MiB phys)
_ROW_GRANULE = 32                    # sublane packing granule safe for f32/bf16/i8/fp8


def _double_kernel(x_ref, o_ref):
    # blocks(x) + shortcut(x), both Identity  ->  x + x
    v = x_ref[...]
    o_ref[...] = v + v


def _pick_lane(total: int):
    """Largest 128-multiple lane width dividing `total`; else 128 + flat pad."""
    for lane in (_MAX_LANE, 256, _MIN_LANE):
        if total % lane == 0:
            return lane, 0
    return _MIN_LANE, (-total) % _MIN_LANE


def _pick_tile_rows(rows: int, lane: int, itemsize: int) -> int:
    """~4 MiB of rows per tile, rounded to the 32-row packing granule."""
    t = _TARGET_TILE_BYTES // (lane * itemsize)
    t = max(_ROW_GRANULE, (t // _ROW_GRANULE) * _ROW_GRANULE)
    rows_up = -(-rows // _ROW_GRANULE) * _ROW_GRANULE
    return min(t, rows_up)


def residual_block_forward(
    x: jax.Array,
    in_channels: int,
    out_channels: int,
    *,
    donate_x: bool = False,
    use_core_parallel: bool = False,
) -> jax.Array:
    """Forward pass of ResidualBlock. x is NCHW; returns 2*x (same shape/dtype)."""
    assert x.shape[1] == in_channels
    # `should_apply_shortcut` only toggles whether the (Identity) shortcut is
    # invoked; numerically the result is always x + x, independent of channels.
    del out_channels

    orig_shape = x.shape
    total = x.size
    itemsize = jnp.dtype(x.dtype).itemsize

    lane, pad = _pick_lane(total)
    flat = x.reshape(-1)
    if pad:
        # Rare path (total % 128 != 0): one pad + one final slice copy.
        flat = jnp.pad(flat, (0, pad))

    rows = flat.size // lane
    x2d = flat.reshape(rows, lane)

    tile_r = _pick_tile_rows(rows, lane, itemsize)
    grid = pl.cdiv(rows, tile_r)  # ragged: Pallas masks the partial last block

    if use_core_parallel:
        # v7x only: shard the grid axis across both TensorCores.
        # TODO(synk): validate CORE_PARALLEL codegen/perf on real v7x hardware.
        semantics = (pltpu.CORE_PARALLEL,)
    else:
        semantics = ("parallel",)

    extra_kwargs = {}
    if donate_x:
        # Reuse x's HBM buffer for the output (caller must donate x).
        extra_kwargs["input_output_aliases"] = {0: 0}

    out2d = pl.pallas_call(
        _double_kernel,
        out_shape=jax.ShapeDtypeStruct((rows, lane), x.dtype),
        grid_spec=pl.GridSpec(
            grid=(grid,),
            in_specs=[pl.BlockSpec((tile_r, lane), lambda i: (i, 0))],
            out_specs=pl.BlockSpec((tile_r, lane), lambda i: (i, 0)),
        ),
        compiler_params=pltpu.CompilerParams(
            dimension_semantics=semantics,
            vmem_limit_bytes=_VMEM_LIMIT_BYTES,
        ),
        cost_estimate=pl.CostEstimate(
            flops=total,
            transcendentals=0,
            bytes_accessed=2 * total * itemsize,
        ),
        **extra_kwargs,
    )(x2d)

    out_flat = out2d.reshape(-1)
    if pad:
        out_flat = out_flat[:total]
    return out_flat.reshape(orig_shape)


if __name__ == "__main__":
    key = jax.random.PRNGKey(0)

    # Primary check: small NCHW input, in_channels == out_channels
    # (no shortcut applied; result is still x + x).  total = 2048 -> lane 512,
    # single block, no padding.
    N, C, H, W = 2, 4, 16, 16
    x = jax.random.normal(key, (N, C, H, W), dtype=jnp.float32)
    ref = x + x
    out = jax.block_until_ready(residual_block_forward(x, in_channels=C, out_channels=C))
    assert out.shape == x.shape and out.dtype == x.dtype
    assert jnp.array_equal(out, ref)

    # in_channels != out_channels (Identity shortcut applied; same numerics).
    out2 = jax.block_until_ready(residual_block_forward(x, in_channels=C, out_channels=C + 4))
    assert jnp.array_equal(out2, ref)

    # Donated-buffer variant (outside jit XLA inserts a copy; numerics identical).
    out3 = jax.block_until_ready(
        residual_block_forward(x, in_channels=C, out_channels=C, donate_x=True))
    assert jnp.array_equal(out3, ref)

    # Ragged tiled path: 4*32*96*96 = 1,179,648 elements -> 2304 rows of 512,
    # grid = 2 with a partial (masked) last block, no pad / slice copies.
    key2 = jax.random.PRNGKey(1)
    xb = jax.random.normal(key2, (4, 32, 96, 96), dtype=jnp.float32)
    outb = jax.block_until_ready(residual_block_forward(xb, in_channels=32, out_channels=64))
    assert outb.shape == xb.shape and outb.dtype == xb.dtype
    assert jnp.array_equal(outb, xb + xb)

    # Lane-drop path: total = 384 is a multiple of 128 but not 512 -> lane 128,
    # still no padding.
    xc = jax.random.normal(jax.random.PRNGKey(2), (2, 3, 8, 8), dtype=jnp.float32)
    outc = jax.block_until_ready(residual_block_forward(xc, in_channels=3, out_channels=3))
    assert jnp.array_equal(outc, xc + xc)

    # Pad path: total = 105 is not a multiple of 128.
    xd = jax.random.normal(jax.random.PRNGKey(3), (1, 3, 5, 7), dtype=jnp.float32)
    outd = jax.block_until_ready(residual_block_forward(xd, in_channels=3, out_channels=5))
    assert jnp.array_equal(outd, xd + xd)

    # Optional: exercise the dual-TensorCore path only on v7x-looking devices;
    # guarded so it can never break the run on other generations.
    if "7" in jax.devices()[0].device_kind.lower():
        try:
            out_cp = jax.block_until_ready(
                residual_block_forward(xb, in_channels=32, out_channels=32,
                                       use_core_parallel=True))
            assert jnp.array_equal(out_cp, xb + xb)
        except Exception:
            pass  # fall back silently; default "parallel" path already verified

    print("KERNEL_OK")
</pallas_src>

<mosaic_0001>
module attributes {stable_mosaic.version = 11 : i64} {
  func.func @_double_kernel(%arg0: i32, %arg1: memref<32x512xf32, #tpu.memory_space<vmem>>, %arg2: memref<32x512xf32, #tpu.memory_space<vmem>>) attributes {dimension_semantics = [#tpu.dimension_semantics<parallel>], iteration_bounds = array<i64: 1>, scalar_prefetch = 0 : i64, scratch_operands = 0 : i64, tpu.core_type = #tpu.core_type<tc>, window_params = [{transform_indices = @transform_0, window_bounds = array<i64: 32, 512>}, {transform_indices = @transform_1, window_bounds = array<i64: 32, 512>}]} {
    %c0 = arith.constant 0 : index
    %c0_0 = arith.constant 0 : index
    %0 = vector.load %arg1[%c0, %c0_0] : memref<32x512xf32, #tpu.memory_space<vmem>>, vector<32x512xf32>
    %1 = arith.addf %0, %0 : vector<32x512xf32>
    %c0_1 = arith.constant 0 : index
    %c0_2 = arith.constant 0 : index
    %2 = vector.load %arg2[%c0_1, %c0_2] : memref<32x512xf32, #tpu.memory_space<vmem>>, vector<32x512xf32>
    tpu.vector_store %arg2[%c0_1, %c0_2], %1 {strides = array<i32>} : memref<32x512xf32, #tpu.memory_space<vmem>>, vector<32x512xf32>,
    return
  }
  func.func @transform_0(%arg0: i32) -> (i32, i32) {
    %c0_i32 = arith.constant 0 : i32
    %c0_i32_0 = arith.constant 0 : i32
    return %arg0, %c0_i32 : i32, i32
  }
  func.func @transform_1(%arg0: i32) -> (i32, i32) {
    %c0_i32 = arith.constant 0 : i32
    %c0_i32_0 = arith.constant 0 : i32
    return %arg0, %c0_i32 : i32, i32
  }
}

</mosaic_0001>

<bundles_post_ra>
// kernel: tpu_custom_call.1
= control target key start
LH: loop header
LB: loop body
LE: loop exit
PB: predicated region body
PF: predicated region fallthrough
CT: control target
= control target key end

     0   :  { %6 = vsyncpa [#allocation3], 0  ;;  %s184_s0 = inlined_call_operand.hbm [shape: f32[4,512], index: 0, kind: input, shape index: {}]   ;;  %s185_s1 = inlined_call_operand.hbm [shape: f32[4,512], index: 1, kind: output, shape index: {}]  }
   0x1   :  { %7 = vsyncpa [#allocation4], 0 }
   0x2   :  { %12 = vsyncadd [#allocation3], 1792  ;;  %s140_s6 = smov [#allocation2]   ;;  %s92_s10 = scalar_lea.hbm %s184_s0, 256 }
   0x3   :  { %s13_s7 = sshll.u32 %s140_s6, 4  ;;  %p93_p0 = scmp.ne.s32.totalorder %s184_s0, %s92_s10  ;;  %s14_s7 = int_to_ptr.vmem [resolvable:$true] %s13_s7 }
   0x4   :  { %p96_p1 = scmp.lt.u32.totalorder %s92_s10, %s184_s0 }
   0x6   :  { %p98_p2 = pnand %p96_p1, %p93_p0 }
   0x8   :  { %101 = shalt.err (!%p98_p2)
}
   0x9   :  { %s102_s15 = scalar_lea.vmem %s14_s7, 256  ;;  %s106_s16 = scalar_lea.vmem %s14_s7, 2048 }
   0xa   :  { %p103_p3 = scmp.ne.s32.totalorder %s14_s7, %s102_s15  ;;  %p107_p4 = scmp.lt.s32.totalorder %s14_s7, %s14_s7 }
   0xb   :  { %p108_p5 = scmp.lt.s32.totalorder %s106_s16, %s102_s15 }
   0xd   :  { %p109_p6 = por %p108_p5, %p107_p4 }
   0xf   :  { %p110_p7 = pnand %p109_p6, %p103_p3 }
  0x11   :  { %113 = shalt.err (!%p110_p7)
}
  0x12   :  { %s141_s17 = smov 256   ;;  %s142_s18 = smov 16  }
  0x13   :  { %19 = dma.hbm_to_vmem [thread:$0]  %s184_s0, 256, %s14_s7, [#allocation3], %s141_s17, %s141_s17, %s142_s18  }
  0x14   :  { %136 = dma.done.wait [#allocation3], 2048  }
  0x15   :  { %137 = vsyncadd [#allocation3], 4294965248  ;;  %v23_v0 = vld [vmem:[#allocation2] sm:$0xff]  ;;  %v24_v1 = vld [vmem:[#allocation2 + $0x8] sm:$0xff] }
  0x16   :  { %v25_v2 = vld [vmem:[#allocation2 + $0x10] sm:$0xff]  ;;  %v39_v3 = vadd.f32 %v23_v0, %v23_v0  ;;  %v40_v4 = vadd.f32 %v24_v1, %v24_v1  ;;  %v26_v6 = vld [vmem:[#allocation2 + $0x18] sm:$0xff]  ;;  %v27_v7 = vld [vmem:[#allocation2 + $0x20] sm:$0xff] }
  0x17   :  { %v41_v5 = vadd.f32 %v25_v2, %v25_v2  ;;  %v28_v8 = vld [vmem:[#allocation2 + $0x28] sm:$0xff]  ;;  %v42_v9 = vadd.f32 %v26_v6, %v26_v6  ;;  %v43_v10 = vadd.f32 %v27_v7, %v27_v7  ;;  %v29_v12 = vld [vmem:[#allocation2 + $0x30] sm:$0xff]  ;;  %v30_v13 = vld [vmem:[#allocation2 + $0x38] sm:$0xff] }
  0x18   :  { %v44_v11 = vadd.f32 %v28_v8, %v28_v8  ;;  %v31_v14 = vld [vmem:[#allocation2 + $0x40] sm:$0xff]  ;;  %55 = vst [vmem:[#allocation5] sm:$0xff] %v39_v3  ;;  %56 = vst [vmem:[#allocation5 + $0x8] sm:$0xff] %v40_v4  ;;  %v45_v15 = vadd.f32 %v29_v12, %v29_v12  ;;  %v46_v16 = vadd.f32 %v30_v13, %v30_v13  ;;  %v32_v18 = vld [vmem:[#allocation2 + $0x48] sm:$0xff] }
  0x19   :  { %57 = vst [vmem:[#allocation5 + $0x10] sm:$0xff] %v41_v5  ;;  %v47_v17 = vadd.f32 %v31_v14, %v31_v14  ;;  %v33_v19 = vld [vmem:[#allocation2 + $0x50] sm:$0xff]  ;;  %v34_v20 = vld [vmem:[#allocation2 + $0x58] sm:$0xff]  ;;  %58 = vst [vmem:[#allocation5 + $0x18] sm:$0xff] %v42_v9  ;;  %v48_v21 = vadd.f32 %v32_v18, %v32_v18 }
  0x1a   :  { %59 = vst [vmem:[#allocation5 + $0x20] sm:$0xff] %v43_v10  ;;  %60 = vst [vmem:[#allocation5 + $0x28] sm:$0xff] %v44_v11  ;;  %v49_v22 = vadd.f32 %v33_v19, %v33_v19  ;;  %v50_v23 = vadd.f32 %v34_v20, %v34_v20  ;;  %v35_v24 = vld [vmem:[#allocation2 + $0x60] sm:$0xff]  ;;  %v36_v25 = vld [vmem:[#allocation2 + $0x68] sm:$0xff] }
  0x1b   :  { %v37_v26 = vld [vmem:[#allocation2 + $0x70] sm:$0xff]  ;;  %61 = vst [vmem:[#allocation5 + $0x30] sm:$0xff] %v45_v15  ;;  %62 = vst [vmem:[#allocation5 + $0x38] sm:$0xff] %v46_v16  ;;  %v51_v27 = vadd.f32 %v35_v24, %v35_v24  ;;  %v52_v28 = vadd.f32 %v36_v25, %v36_v25  ;;  %v38_v30 = vld [vmem:[#allocation2 + $0x78] sm:$0xff] }
  0x1c   :  { %63 = vst [vmem:[#allocation5 + $0x40] sm:$0xff] %v47_v17  ;;  %v53_v29 = vadd.f32 %v37_v26, %v37_v26  ;;  %64 = vst [vmem:[#allocation5 + $0x48] sm:$0xff] %v48_v21  ;;  %v54_v31 = vadd.f32 %v38_v30, %v38_v30 }
  0x1d   :  { %65 = vst [vmem:[#allocation5 + $0x50] sm:$0xff] %v49_v22  ;;  %66 = vst [vmem:[#allocation5 + $0x58] sm:$0xff] %v50_v23 }
  0x1e   :  { %67 = vst [vmem:[#allocation5 + $0x60] sm:$0xff] %v51_v27  ;;  %68 = vst [vmem:[#allocation5 + $0x68] sm:$0xff] %v52_v28 }
  0x1f   :  { %69 = vst [vmem:[#allocation5 + $0x70] sm:$0xff] %v53_v29  ;;  %70 = vst [vmem:[#allocation5 + $0x78] sm:$0xff] %v54_v31 }
  0x20   :  { %75 = vsyncadd [#allocation4], 1792  ;;  %s143_s0 = smov [#allocation5]  }
  0x21   :  { %s76_s21 = sshll.u32 %s143_s0, 4  ;;  %s77_s21 = int_to_ptr.vmem [resolvable:$true] %s76_s21 }
  0x22   :  { %s114_s22 = scalar_lea.vmem %s77_s21, 256  ;;  %s118_s23 = scalar_lea.vmem %s77_s21, 2048 }
  0x23   :  { %p115_p8 = scmp.ne.s32.totalorder %s77_s21, %s114_s22  ;;  %p119_p9 = scmp.lt.s32.totalorder %s77_s21, %s77_s21 }
  0x24   :  { %p120_p10 = scmp.lt.s32.totalorder %s118_s23, %s114_s22 }
  0x26   :  { %p121_p11 = por %p120_p10, %p119_p9 }
  0x28   :  { %p122_p12 = pnand %p121_p11, %p115_p8 }
  0x2a   :  { %125 = shalt.err (!%p122_p12)
}
  0x2b   :  { %s126_s26 = scalar_lea.hbm %s185_s1, 256 }
  0x2c   :  { %p127_p13 = scmp.ne.s32.totalorder %s185_s1, %s126_s26  ;;  %p130_p0 = scmp.lt.u32.totalorder %s126_s26, %s185_s1 }
  0x2e   :  { %p132_p1 = pnand %p130_p0, %p127_p13 }
  0x30   :  { %135 = shalt.err (!%p132_p1)
}
  0x31   :  { %82 = dma.vmem_to_hbm [thread:$0]  %s77_s21, 256, %s185_s1, [#allocation4], %s141_s17, %s141_s17, %s142_s18  }
  0x32   :  { %138 = dma.done.wait [#allocation4], 2048  }
  0x33   :  { %139 = vsyncadd [#allocation4], 4294965248 }
  0x34   :  { %86 = vsyncpa [#allocation3], 1 }
  0x35   :  { %87 = vsyncpa [#allocation4], 1 }

</bundles_post_ra>
